<compile_context>
chip_gen: v7x
topology: tpu7x:2x2x1
jax: 0.10.0
libtpu: 0.0.40
codegen_flags: <defaults>
</compile_context>

<pallas_src>
import functools

import jax
import jax.numpy as jnp
from jax.experimental import pallas as pl
from jax.experimental.pallas import tpu as pltpu


def _round_up(n, m):
    return ((n + m - 1) // m) * m


def qa2b_fused_kernel(x_ref, w_ref, o_ref):
    # Fused 4-layer bias-free Linear chain == one per-row dot with w_row.
    # VPU elementwise multiply (4 VALU slots) + XLU cross-lane sum; avoids the
    # MXU LHS row-feed serialization flagged for N=1 outputs (esp. f32 LHS on
    # v5e/v6e, and vs. v7x's 3.2 TB/s HBM).
    x = x_ref[...].astype(jnp.float32)          # (tb, H3)
    w = w_ref[...].astype(jnp.float32)          # (1, H3), sublane-broadcast
    o_ref[...] = jnp.sum(x * w, axis=-1, keepdims=True)


def _choose_tb(B, tb_max):
    """Pick a batch tile: as large as useful, and an even block count when >1
    so v7x's two TensorCores split the grid evenly."""
    tb = max(8, min(tb_max, _round_up(B, 8)))
    nblk = pl.cdiv(B, tb)
    if nblk > 1 and nblk % 2:
        tb = max(8, _round_up(pl.cdiv(B, nblk + 1), 8))
        nblk = pl.cdiv(B, tb)
    return tb, nblk


@functools.partial(jax.jit, static_argnames=("tb_max",))
def qa2b_forward(x, w_linin, w_lin, w_regrout, *, tb_max=8192):
    """Forward pass of QA2BModel.

    x:          (B, H3) activations (H3 = hsz * 3), f32 or bf16.
    w_linin:    (H3, H3)  PyTorch layout (out_features, in_features).
    w_lin:      (H3, H3)  applied twice, as in the PyTorch forward.
    w_regrout:  (1, H3).
    Returns (B, 1) float32 predictions.
    """
    B, H3 = x.shape

    # Algebraic fusion, cheapest association: three (1,H3)@(H3,H3) row-matvecs.
    # pred = x @ (W_reg @ W_lin @ W_lin @ W_in)^T
    w_row = (
        w_regrout.astype(jnp.float32)
        @ w_lin.astype(jnp.float32)
        @ w_lin.astype(jnp.float32)
        @ w_linin.astype(jnp.float32)
    )  # (1, H3), kept in f32 (tiny; avoids quantizing the 3-layer product)

    tb, nblk = _choose_tb(B, tb_max)

    cost = pl.CostEstimate(
        flops=2 * B * H3,
        transcendentals=0,
        bytes_accessed=int(x.size) * x.dtype.itemsize + int(w_row.size) * 4 + B * 4,
    )

    out = pl.pallas_call(
        qa2b_fused_kernel,
        out_shape=jax.ShapeDtypeStruct((B, 1), jnp.float32),
        grid=(nblk,),
        in_specs=[
            # x: tiled over the batch axis only; last dim = full array dim (H3)
            # so no feature pad / extra HBM pass.  Ragged last block is masked.
            pl.BlockSpec((tb, H3), lambda i: (i, 0)),
            # fused weight row: one tiny block, resident across all grid steps.
            pl.BlockSpec((1, H3), lambda i: (0, 0)),
        ],
        # Narrow (tb, 1) store is ~1/H3 of the read traffic — not worth a
        # lane-dense re-layout (per review).
        out_specs=pl.BlockSpec((tb, 1), lambda i: (i, 0)),
        compiler_params=pltpu.CompilerParams(
            dimension_semantics=("parallel",),
        ),
        cost_estimate=cost,
    )(x, w_row)

    return out


def init_linear_weight(key, out_features, in_features):
    """Deterministic init mimicking nn.Linear default: U(-1/sqrt(in), 1/sqrt(in))."""
    bound = 1.0 / jnp.sqrt(jnp.float32(in_features))
    return jax.random.uniform(
        key, (out_features, in_features), jnp.float32, -bound, bound
    )


if __name__ == "__main__":
    hsz = 32
    H3 = hsz * 3          # 96
    B = 16                # small demo batch; design targets large B

    root = jax.random.PRNGKey(0)
    k_x, k_w1, k_w2, k_w3 = jax.random.split(root, 4)

    # Parameters in PyTorch layout (out_features, in_features).
    w_linin = init_linear_weight(k_w1, H3, H3)     # linin:   H3 -> H3
    w_lin = init_linear_weight(k_w2, H3, H3)       # lin:     H3 -> H3 (used twice)
    w_regrout = init_linear_weight(k_w3, 1, H3)    # regrout: H3 -> 1

    x = jax.random.normal(k_x, (B, H3), jnp.float32)
    # For bandwidth-bound production batches, feed bf16 x from the *producer*
    # (no wrapper-side astype — that would be an extra HBM pass); the kernel
    # upcasts per-vreg and keeps the fused weight in f32.

    pred = qa2b_forward(x, w_linin, w_lin, w_regrout)
    pred = jax.block_until_ready(pred)

    # Reference in plain JAX: exactly the PyTorch forward (unfused order).
    # NOTE: sm/relu/tanh/drop exist on the module but are never used in forward.
    ref = (((x @ w_linin.T) @ w_lin.T) @ w_lin.T) @ w_regrout.T
    assert pred.shape == (B, 1)
    assert jnp.allclose(pred, ref, atol=1e-4, rtol=1e-4), (
        f"max abs err {jnp.max(jnp.abs(pred - ref))}"
    )

    print("KERNEL_OK")
</pallas_src>

<mosaic_0001>
module attributes {stable_mosaic.version = 11 : i64} {
  func.func @qa2b_fused_kernel(%arg0: i32, %arg1: memref<16x96xf32, #tpu.memory_space<vmem>>, %arg2: memref<1x96xf32, #tpu.memory_space<vmem>>, %arg3: memref<16x1xf32, #tpu.memory_space<vmem>>) attributes {dimension_semantics = [#tpu.dimension_semantics<parallel>], iteration_bounds = array<i64: 1>, scalar_prefetch = 0 : i64, scratch_operands = 0 : i64, tpu.core_type = #tpu.core_type<tc>, window_params = [{transform_indices = @transform_0, window_bounds = array<i64: 16, 96>}, {pipeline_mode = #tpu.pipeline_mode<synchronous>, transform_indices = @transform_1, window_bounds = array<i64: 1, 96>}, {transform_indices = @transform_2, window_bounds = array<i64: 16, 1>}]} {
    %c0 = arith.constant 0 : index
    %c0_0 = arith.constant 0 : index
    %0 = vector.load %arg1[%c0, %c0_0] : memref<16x96xf32, #tpu.memory_space<vmem>>, vector<16x96xf32>
    %c0_1 = arith.constant 0 : index
    %c0_2 = arith.constant 0 : index
    %1 = vector.load %arg2[%c0_1, %c0_2] : memref<1x96xf32, #tpu.memory_space<vmem>>, vector<1x96xf32>
    %2 = vector.broadcast %1 : vector<1x96xf32> to vector<16x96xf32>
    %3 = arith.mulf %0, %2 : vector<16x96xf32>
    %cst = arith.constant dense<0.000000e+00> : vector<16xf32>
    %4 = vector.multi_reduction <add>, %3, %cst [1] : vector<16x96xf32> to vector<16xf32>
    %5 = vector.shape_cast %4 : vector<16xf32> to vector<16x1xf32>
    %c0_3 = arith.constant 0 : index
    %c0_4 = arith.constant 0 : index
    %6 = vector.load %arg3[%c0_3, %c0_4] : memref<16x1xf32, #tpu.memory_space<vmem>>, vector<16x1xf32>
    tpu.vector_store %arg3[%c0_3, %c0_4], %5 {strides = array<i32>} : memref<16x1xf32, #tpu.memory_space<vmem>>, vector<16x1xf32>,
    return
  }
  func.func @transform_0(%arg0: i32) -> (i32, i32) {
    %c0_i32 = arith.constant 0 : i32
    %c0_i32_0 = arith.constant 0 : i32
    return %arg0, %c0_i32 : i32, i32
  }
  func.func @transform_1(%arg0: i32) -> (i32, i32) {
    %c0_i32 = arith.constant 0 : i32
    %c0_i32_0 = arith.constant 0 : i32
    %c0_i32_1 = arith.constant 0 : i32
    return %c0_i32, %c0_i32_0 : i32, i32
  }
  func.func @transform_2(%arg0: i32) -> (i32, i32) {
    %c0_i32 = arith.constant 0 : i32
    %c0_i32_0 = arith.constant 0 : i32
    return %arg0, %c0_i32 : i32, i32
  }
}

</mosaic_0001>

<bundles_post_ra>
// kernel: qa2b_forward.1
= control target key start
LH: loop header
LB: loop body
LE: loop exit
PB: predicated region body
PF: predicated region fallthrough
CT: control target
= control target key end

     0   :  { %vm22_vm0 = vcmask 785408   ;;  %vm29_vm1 = vcmask 7168   ;;  %s67_s0 = inlined_call_operand.vmem [shape: f32[16,96], index: 0, kind: input, shape index: {}]   ;;  %s68_s1 = inlined_call_operand.vmem [shape: f32[1,96], index: 1, kind: input, shape index: {}]   ;;  %s69_s2 = inlined_call_operand.vmem [shape: f32[16,1], index: 2, kind: output, shape index: {}]  }
   0x1   :  { %v11_v0 = vld [vmem:[%s67_s0] sm:$0xff]  ;;  %v12_v2 = vld [vmem:[%s67_s0 + $0x8] sm:$0xff] }
   0x2   :  { %v36_v1 = vld [vmem:[%s68_s1] ss:$0 sm:$0xff] }
   0x3   :  { %v20_v3 = vmul.f32 %v36_v1, %v11_v0  ;;  %v21_v4 = vmul.f32 %v36_v1, %v12_v2 }
   0x5   :  { %v23_v5 = vsel %vm22_vm0, %v20_v3, 0.0  ;;  %v26_v6 = vsel %vm22_vm0, %v21_v4, 0.0 }
   0x6   :  { %24 = vadd.xlane.f32.xlu0 %v23_v5 }
   0xa   :  { %27 = vadd.xlane.f32.xlu0 %v26_v6 }
  0x93   :  { %v25_v7 = vpop.xlane.xlu0 %24 }
  0x94   :  { %30 = vst.msk [vmem:[%s69_s2] sm:$0xff] %vm29_vm1, %v25_v7 }
  0x97   :  { %v28_v8 = vpop.xlane.xlu0 %27 }
  0x98   :  { %31 = vst.msk [vmem:[%s69_s2 + $0x8] sm:$0xff] %vm29_vm1, %v28_v8 }

</bundles_post_ra>
